<compile_context>
chip_gen: v7x
topology: tpu7x:2x2x1
jax: 0.10.0
libtpu: 0.0.40
codegen_flags: <defaults>
</compile_context>

<pallas_src>
import functools
import math

import jax
import jax.numpy as jnp
from jax.experimental import pallas as pl
from jax.experimental.pallas import tpu as pltpu

LN_EPS = 1e-5

_BUFFERED1_OK = True  # flips to False if this JAX build rejects pl.Buffered(1)


def _round_up(x, m):
    return ((x + m - 1) // m) * m


def _tpu_generation():
    """Best-effort TPU generation (5/6/7...); defaults to 6."""
    kind = ""
    try:
        kind = jax.devices()[0].device_kind.lower()
    except Exception:
        pass
    for g in (7, 6, 5, 4):
        if f"v{g}" in kind:
            return g
    return 6


def _vmem_capacity_bytes(gen):
    try:
        cap = int(pltpu.get_tpu_info().vmem_capacity_bytes)
        if cap > 0:
            return cap
    except Exception:
        pass
    return (64 if gen >= 7 else 128) * 1024 * 1024


def _finalize_layernorm(y, ln, *, ff_true, ff_pad):
    """bias + (eval-mode dropout) + LayerNorm over the TRUE ff_dim.

    `y` is (tm, Fp) f32 with the padded trailing columns exactly zero;
    `ln` rows are (b2, gamma, beta), zero in the padded columns.
    """
    y = y + ln[0:1, :]                       # + b2 (padded cols stay exactly 0)
    # TODO(synk): training-mode dropout (PRNG masking) not implemented; eval-mode identity.
    inv_n = 1.0 / ff_true
    mean = jnp.sum(y, axis=-1, keepdims=True) * inv_n   # padded cols are 0 -> exact
    d = y - mean
    if ff_pad:
        # Mask padded columns out of the variance (two-pass form, no cancellation).
        col = jax.lax.broadcasted_iota(jnp.int32, d.shape, d.ndim - 1)
        d = jnp.where(col < ff_true, d, 0.0)
    var = jnp.sum(d * d, axis=-1, keepdims=True) * inv_n
    out = d * jax.lax.rsqrt(var + LN_EPS)
    return out * ln[1:2, :] + ln[2:3, :]     # * gamma + beta (padded cols -> 0)


def _ffn_kernel_resident(x_ref, w1_ref, b1_ref, w2_ref, ln_ref, o_ref, *,
                         ff_true, ff_pad):
    # x: (tm, Hp) bf16 | w1: (Hp, F4p) bf16 | b1: (1, F4p) f32
    # w2: (F4p, Fp) bf16 | ln: (3, Fp) f32 rows = (b2, gamma, beta)
    h = jnp.dot(x_ref[...], w1_ref[...], preferred_element_type=jnp.float32)
    h = jnp.maximum(h + b1_ref[...], 0.0)
    y = jnp.dot(h.astype(jnp.bfloat16), w2_ref[...],
                preferred_element_type=jnp.float32)
    o_ref[...] = _finalize_layernorm(
        y, ln_ref[...], ff_true=ff_true, ff_pad=ff_pad).astype(o_ref.dtype)


def _ffn_kernel_ktiled(x_ref, w1_ref, b1_ref, w2_ref, ln_ref, o_ref, acc_ref, *,
                       ff_true, ff_pad):
    # x: (tm, Hp) bf16 | w1: (Hp, tk4) bf16 | b1: (1, tk4) f32
    # w2: (tk4, Fp) bf16 | ln: (3, Fp) f32 | acc: (tm, Fp) f32 scratch
    k = pl.program_id(1)

    @pl.when(k == 0)
    def _():
        acc_ref[...] = jnp.zeros_like(acc_ref)

    h = jnp.dot(x_ref[...], w1_ref[...], preferred_element_type=jnp.float32)
    h = jnp.maximum(h + b1_ref[...], 0.0)            # ReLU is elementwise -> k-tiling safe
    acc_ref[...] += jnp.dot(h.astype(jnp.bfloat16), w2_ref[...],
                            preferred_element_type=jnp.float32)

    @pl.when(k == pl.num_programs(1) - 1)
    def _():
        o_ref[...] = _finalize_layernorm(
            acc_ref[...], ln_ref[...], ff_true=ff_true,
            ff_pad=ff_pad).astype(o_ref.dtype)


def prepare_params(w1, b1, w2, b2, gamma, beta, *, pad_gran=None):
    """One-time prep: bf16 weights, zero-pad feature dims, pack LN params.

    pad_gran: lane padding for the ff dims; defaults to the local MXU width
    (128 on v5e, 256 on v6e/v7x).
    """
    if pad_gran is None:
        pad_gran = 128 if _tpu_generation() <= 5 else 256
    H, F4 = w1.shape
    F = w2.shape[1]
    Hp = _round_up(H, 128)
    F4p = _round_up(F4, pad_gran)
    Fp = _round_up(F, pad_gran)
    w1p = jnp.pad(w1, ((0, Hp - H), (0, F4p - F4))).astype(jnp.bfloat16)
    b1p = jnp.pad(b1, (0, F4p - F4)).reshape(1, F4p).astype(jnp.float32)
    w2p = jnp.pad(w2, ((0, F4p - F4), (0, Fp - F))).astype(jnp.bfloat16)
    lnp = jnp.stack([jnp.pad(b2, (0, Fp - F)),
                     jnp.pad(gamma, (0, Fp - F)),
                     jnp.pad(beta, (0, Fp - F))]).astype(jnp.float32)   # (3, Fp)
    return dict(w1=w1p, b1=b1p, w2=w2p, ln=lnp,
                hidden_dim=H, ff_dim=F, Hp=Hp, F4p=F4p, Fp=Fp,
                pad_gran=pad_gran)


def _call_ffn(xp, params, *, tm_eff, Mp, out_dtype, vmem_cap, single_buffer):
    H, F = params["hidden_dim"], params["ff_dim"]
    Hp, F4p, Fp = params["Hp"], params["F4p"], params["Fp"]
    gran = params["pad_gran"]
    w1p, b1p, w2p, lnp = params["w1"], params["b1"], params["w2"], params["ln"]
    out_isz = jnp.dtype(out_dtype).itemsize
    ff_pad = Fp - F

    def spec(shape, imap, const):
        # Constant-index operands: nothing to pipeline -> single buffer.
        if const and single_buffer:
            return pl.BlockSpec(shape, imap, pipeline_mode=pl.Buffered(1))
        return pl.BlockSpec(shape, imap)

    flops = 2 * Mp * (Hp * F4p + F4p * Fp)
    bytes_accessed = (xp.size * 2 + w1p.size * 2 + w2p.size * 2
                      + b1p.size * 4 + lnp.size * 4 + Mp * Fp * out_isz)
    cost = pl.CostEstimate(flops=flops, transcendentals=Mp,
                           bytes_accessed=bytes_accessed)

    budget = int(0.6 * vmem_cap)
    wb = 1 if single_buffer else 2
    resident_need = (
        2 * tm_eff * Hp * 2                                   # x (double-buffered, bf16)
        + 2 * tm_eff * Fp * out_isz                           # out (double-buffered)
        + wb * (Hp * F4p * 2 + F4p * Fp * 2 + F4p * 4 + 3 * Fp * 4)
        + tm_eff * F4p * 6 + tm_eff * Fp * 4)                 # h f32+bf16, y f32 temps

    if resident_need <= budget:
        # Fully-resident weights: one matmul pair per row tile, no accumulator.
        kernel = functools.partial(_ffn_kernel_resident, ff_true=F, ff_pad=ff_pad)
        grid = (Mp // tm_eff,)
        in_specs = [
            spec((tm_eff, Hp), lambda i: (i, 0), False),   # x rows (pipelined)
            spec((Hp, F4p), lambda i: (0, 0), True),       # W1 (resident, bf16)
            spec((1, F4p), lambda i: (0, 0), True),        # b1
            spec((F4p, Fp), lambda i: (0, 0), True),       # W2 (resident, bf16)
            spec((3, Fp), lambda i: (0, 0), True),         # (b2, gamma, beta)
        ]
        out_spec = pl.BlockSpec((tm_eff, Fp), lambda i: (i, 0))   # lane-dense
        scratch_shapes = []
        dim_sem = ("parallel",)
        need = resident_need
    else:
        # K-tiled fallback: stream W1/W2 blocks over F4p, accumulate in VMEM.
        def ktiled_need(tk):
            return (2 * tm_eff * Hp * 2
                    + 2 * tm_eff * Fp * out_isz
                    + 2 * (Hp * tk * 2 + tk * Fp * 2 + tk * 4)   # streamed, 2 bufs
                    + 3 * Fp * 4                                  # ln (single buffer)
                    + tm_eff * Fp * 4                             # f32 accumulator
                    + tm_eff * tk * 6 + tm_eff * Fp * 4)          # h f32+bf16, finalize

        nk = F4p // gran
        tk4 = gran
        for d in range(1, nk + 1):
            if nk % d == 0 and ktiled_need(gran * d) <= budget:
                tk4 = gran * d
        kernel = functools.partial(_ffn_kernel_ktiled, ff_true=F, ff_pad=ff_pad)
        grid = (Mp // tm_eff, F4p // tk4)
        in_specs = [
            spec((tm_eff, Hp), lambda i, k: (i, 0), False),
            spec((Hp, tk4), lambda i, k: (0, k), False),   # streamed (double-buffered)
            spec((1, tk4), lambda i, k: (0, k), False),
            spec((tk4, Fp), lambda i, k: (k, 0), False),   # streamed (double-buffered)
            spec((3, Fp), lambda i, k: (0, 0), True),
        ]
        out_spec = pl.BlockSpec((tm_eff, Fp), lambda i, k: (i, 0))
        scratch_shapes = [pltpu.VMEM((tm_eff, Fp), jnp.float32)]
        dim_sem = ("parallel", "arbitrary")
        need = ktiled_need(tk4)

    vmem_limit = int(min(0.88 * vmem_cap,
                         max(need * 1.25 + (8 << 20), 32 << 20)))

    return pl.pallas_call(
        kernel,
        out_shape=jax.ShapeDtypeStruct((Mp, Fp), out_dtype),
        grid_spec=pltpu.PrefetchScalarGridSpec(
            num_scalar_prefetch=0,
            grid=grid,
            in_specs=in_specs,
            out_specs=out_spec,
            scratch_shapes=scratch_shapes,
        ),
        compiler_params=pltpu.CompilerParams(
            dimension_semantics=dim_sem,
            vmem_limit_bytes=vmem_limit,
        ),
        cost_estimate=cost,
    )(xp, w1p, b1p, w2p, lnp)


def feedforward_pallas(x, params, *, tm=None, out_dtype=None):
    """x: (..., hidden_dim) -> (..., ff_dim).

    tm: row-tile override (default 128 on v5e, 256 on v6e/v7x).
    out_dtype: output dtype (default x.dtype); pass jnp.bfloat16 to halve writeback.
    """
    global _BUFFERED1_OK
    H, F = params["hidden_dim"], params["ff_dim"]
    Hp, Fp = params["Hp"], params["Fp"]

    gen = _tpu_generation()
    vmem_cap = _vmem_capacity_bytes(gen)

    lead = x.shape[:-1]
    M = math.prod(lead) if lead else 1
    if out_dtype is None:
        out_dtype = x.dtype

    # Row tile: generation default, rounded to 16 (bf16 sublane packing).
    if tm is None:
        tm = 128 if gen <= 5 else 256
    tm = _round_up(max(tm, 16), 16)
    tm_eff = min(tm, _round_up(M, 16))
    Mp = _round_up(M, tm_eff)
    # v7x has 2 TensorCores: give the "parallel" M axis >= 2 tiles when rows allow.
    if gen >= 7:
        while Mp // tm_eff < 2 and tm_eff > 128 and M > tm_eff // 2:
            tm_eff = _round_up(tm_eff // 2, 16)
            Mp = _round_up(M, tm_eff)

    # Aligned fast path: avoid an extra HBM pass over x when no padding needed.
    x2d = x.reshape(M, H)
    if Mp != M or Hp != H:
        x2d = jnp.pad(x2d, ((0, Mp - M), (0, Hp - H)))
    xp = x2d if x2d.dtype == jnp.bfloat16 else x2d.astype(jnp.bfloat16)

    kwargs = dict(tm_eff=tm_eff, Mp=Mp, out_dtype=out_dtype, vmem_cap=vmem_cap)
    if _BUFFERED1_OK:
        try:
            out = _call_ffn(xp, params, single_buffer=True, **kwargs)
        except Exception:
            _BUFFERED1_OK = False
            out = _call_ffn(xp, params, single_buffer=False, **kwargs)
    else:
        out = _call_ffn(xp, params, single_buffer=False, **kwargs)

    if Mp != M or Fp != F:
        out = out[:M, :F]
    return out.reshape(*lead, F)


def init_params(key, hidden_dim, ff_dim, dtype=jnp.float32):
    """Synthetic params matching nn.Linear / nn.LayerNorm shapes ((in, out) layout)."""
    k1, k2, k3, k4 = jax.random.split(key, 4)
    lim1 = 1.0 / (hidden_dim ** 0.5)
    lim2 = 1.0 / ((4 * hidden_dim) ** 0.5)
    w1 = jax.random.uniform(k1, (hidden_dim, 4 * hidden_dim), dtype, -lim1, lim1)
    b1 = jax.random.uniform(k2, (4 * hidden_dim,), dtype, -lim1, lim1)
    w2 = jax.random.uniform(k3, (4 * hidden_dim, ff_dim), dtype, -lim2, lim2)
    b2 = jax.random.uniform(k4, (ff_dim,), dtype, -lim2, lim2)
    gamma = jnp.ones((ff_dim,), dtype)
    beta = jnp.zeros((ff_dim,), dtype)
    return w1, b1, w2, b2, gamma, beta


def feedforward_ref(x, w1, b1, w2, b2, gamma, beta):
    """Pure-JAX reference with the same precision policy as the kernel."""
    h = jnp.dot(x.astype(jnp.bfloat16), w1.astype(jnp.bfloat16),
                preferred_element_type=jnp.float32) + b1
    h = jnp.maximum(h, 0.0)
    y = jnp.dot(h.astype(jnp.bfloat16), w2.astype(jnp.bfloat16),
                preferred_element_type=jnp.float32) + b2
    mean = jnp.mean(y, axis=-1, keepdims=True)
    var = jnp.mean((y - mean) ** 2, axis=-1, keepdims=True)
    return (y - mean) * jax.lax.rsqrt(var + LN_EPS) * gamma + beta


if __name__ == "__main__":
    batch, seq, hidden_dim, ff_dim = 2, 8, 32, 32

    key = jax.random.PRNGKey(0)
    kx, kp = jax.random.split(key)
    x = jax.random.normal(kx, (batch, seq, hidden_dim), jnp.float32)
    raw_params = init_params(kp, hidden_dim, ff_dim)
    params = prepare_params(*raw_params)

    out = feedforward_pallas(x, params)
    out = jax.block_until_ready(out)

    ref = feedforward_ref(x, *raw_params)
    assert out.shape == (batch, seq, ff_dim)
    max_err = jnp.max(jnp.abs(out - ref))
    assert jnp.allclose(out, ref, atol=2e-3, rtol=2e-3), \
        f"mismatch vs reference (max |diff|={max_err})"

    print("KERNEL_OK")
</pallas_src>

<mosaic_0001>
module attributes {stable_mosaic.version = 11 : i64} {
  func.func @_ffn_kernel_resident(%arg0: i32, %arg1: memref<16x128xbf16, #tpu.memory_space<vmem>>, %arg2: memref<128x256xbf16, #tpu.memory_space<vmem>>, %arg3: memref<1x256xf32, #tpu.memory_space<vmem>>, %arg4: memref<256x256xbf16, #tpu.memory_space<vmem>>, %arg5: memref<3x256xf32, #tpu.memory_space<vmem>>, %arg6: memref<16x256xf32, #tpu.memory_space<vmem>>) attributes {dimension_semantics = [#tpu.dimension_semantics<parallel>], iteration_bounds = array<i64: 1>, scalar_prefetch = 0 : i64, scratch_operands = 0 : i64, tpu.core_type = #tpu.core_type<tc>, window_params = [{transform_indices = @transform_0, window_bounds = array<i64: 16, 128>}, {pipeline_mode = #tpu.pipeline_mode<synchronous>, transform_indices = @transform_1, window_bounds = array<i64: 128, 256>}, {pipeline_mode = #tpu.pipeline_mode<synchronous>, transform_indices = @transform_2, window_bounds = array<i64: 1, 256>}, {pipeline_mode = #tpu.pipeline_mode<synchronous>, transform_indices = @transform_3, window_bounds = array<i64: 256, 256>}, {pipeline_mode = #tpu.pipeline_mode<synchronous>, transform_indices = @transform_4, window_bounds = array<i64: 3, 256>}, {transform_indices = @transform_5, window_bounds = array<i64: 16, 256>}]} {
    %c0 = arith.constant 0 : index
    %c0_0 = arith.constant 0 : index
    %0 = vector.load %arg1[%c0, %c0_0] : memref<16x128xbf16, #tpu.memory_space<vmem>>, vector<16x128xbf16>
    %c0_1 = arith.constant 0 : index
    %c0_2 = arith.constant 0 : index
    %1 = vector.load %arg2[%c0_1, %c0_2] : memref<128x256xbf16, #tpu.memory_space<vmem>>, vector<128x256xbf16>
    %cst = arith.constant dense<0.000000e+00> : vector<16x256xf32>
    %2 = tpu.matmul %0, %1, %cst {dimension_numbers = #tpu.dot_dimension_numbers<[1], [0], [0], [1], [0, 0, 1, 1], [], []>} : vector<16x128xbf16>, vector<128x256xbf16>, vector<16x256xf32> -> vector<16x256xf32>
    %c0_3 = arith.constant 0 : index
    %c0_4 = arith.constant 0 : index
    %3 = vector.load %arg3[%c0_3, %c0_4] : memref<1x256xf32, #tpu.memory_space<vmem>>, vector<1x256xf32>
    %4 = vector.broadcast %3 : vector<1x256xf32> to vector<16x256xf32>
    %5 = arith.addf %2, %4 : vector<16x256xf32>
    %cst_5 = arith.constant 0.000000e+00 : f32
    %6 = vector.broadcast %cst_5 : f32 to vector<16x256xf32>
    %7 = arith.maximumf %5, %6 : vector<16x256xf32>
    %8 = arith.truncf %7 : vector<16x256xf32> to vector<16x256xbf16>
    %c0_6 = arith.constant 0 : index
    %c0_7 = arith.constant 0 : index
    %9 = vector.load %arg4[%c0_6, %c0_7] : memref<256x256xbf16, #tpu.memory_space<vmem>>, vector<256x256xbf16>
    %cst_8 = arith.constant dense<0.000000e+00> : vector<16x256xf32>
    %10 = tpu.matmul %8, %9, %cst_8 {dimension_numbers = #tpu.dot_dimension_numbers<[1], [0], [0], [1], [0, 0, 1, 1], [], []>} : vector<16x256xbf16>, vector<256x256xbf16>, vector<16x256xf32> -> vector<16x256xf32>
    %c0_9 = arith.constant 0 : index
    %c0_10 = arith.constant 0 : index
    %11 = vector.load %arg5[%c0_9, %c0_10] : memref<3x256xf32, #tpu.memory_space<vmem>>, vector<3x256xf32>
    %12 = vector.extract_strided_slice %11 {offsets = [0, 0], sizes = [1, 256], strides = [1, 1]} : vector<3x256xf32> to vector<1x256xf32>
    %13 = vector.broadcast %12 : vector<1x256xf32> to vector<16x256xf32>
    %14 = arith.addf %10, %13 : vector<16x256xf32>
    %cst_11 = arith.constant dense<0.000000e+00> : vector<16xf32>
    %15 = vector.multi_reduction <add>, %14, %cst_11 [1] : vector<16x256xf32> to vector<16xf32>
    %16 = vector.shape_cast %15 : vector<16xf32> to vector<16x1xf32>
    %cst_12 = arith.constant 3.125000e-02 : f32
    %17 = vector.broadcast %cst_12 : f32 to vector<16x1xf32>
    %18 = arith.mulf %16, %17 : vector<16x1xf32>
    %19 = vector.broadcast %18 : vector<16x1xf32> to vector<16x256xf32>
    %20 = arith.subf %14, %19 : vector<16x256xf32>
    %21 = tpu.iota {dimensions = array<i32: 1>} : vector<16x256xi32>
    %c32_i32 = arith.constant 32 : i32
    %22 = vector.broadcast %c32_i32 : i32 to vector<16x256xi32>
    %23 = arith.cmpi slt, %21, %22 : vector<16x256xi32>
    %cst_13 = arith.constant 0.000000e+00 : f32
    %24 = vector.broadcast %cst_13 : f32 to vector<16x256xf32>
    %25 = arith.select %23, %20, %24 : vector<16x256xi1>, vector<16x256xf32>
    %26 = arith.mulf %25, %25 : vector<16x256xf32>
    %cst_14 = arith.constant dense<0.000000e+00> : vector<16xf32>
    %27 = vector.multi_reduction <add>, %26, %cst_14 [1] : vector<16x256xf32> to vector<16xf32>
    %28 = vector.shape_cast %27 : vector<16xf32> to vector<16x1xf32>
    %cst_15 = arith.constant 3.125000e-02 : f32
    %29 = vector.broadcast %cst_15 : f32 to vector<16x1xf32>
    %30 = arith.mulf %28, %29 : vector<16x1xf32>
    %cst_16 = arith.constant 9.99999974E-6 : f32
    %31 = vector.broadcast %cst_16 : f32 to vector<16x1xf32>
    %32 = arith.addf %30, %31 : vector<16x1xf32>
    %33 = math.rsqrt %32 : vector<16x1xf32>
    %34 = vector.broadcast %33 : vector<16x1xf32> to vector<16x256xf32>
    %35 = arith.mulf %25, %34 : vector<16x256xf32>
    %36 = vector.extract_strided_slice %11 {offsets = [1, 0], sizes = [1, 256], strides = [1, 1]} : vector<3x256xf32> to vector<1x256xf32>
    %37 = vector.broadcast %36 : vector<1x256xf32> to vector<16x256xf32>
    %38 = arith.mulf %35, %37 : vector<16x256xf32>
    %39 = vector.extract_strided_slice %11 {offsets = [2, 0], sizes = [1, 256], strides = [1, 1]} : vector<3x256xf32> to vector<1x256xf32>
    %40 = vector.broadcast %39 : vector<1x256xf32> to vector<16x256xf32>
    %41 = arith.addf %38, %40 : vector<16x256xf32>
    %c0_17 = arith.constant 0 : index
    %c0_18 = arith.constant 0 : index
    %42 = vector.load %arg6[%c0_17, %c0_18] : memref<16x256xf32, #tpu.memory_space<vmem>>, vector<16x256xf32>
    tpu.vector_store %arg6[%c0_17, %c0_18], %41 {strides = array<i32>} : memref<16x256xf32, #tpu.memory_space<vmem>>, vector<16x256xf32>,
    return
  }
  func.func @transform_0(%arg0: i32) -> (i32, i32) {
    %c0_i32 = arith.constant 0 : i32
    %c0_i32_0 = arith.constant 0 : i32
    return %arg0, %c0_i32 : i32, i32
  }
  func.func @transform_1(%arg0: i32) -> (i32, i32) {
    %c0_i32 = arith.constant 0 : i32
    %c0_i32_0 = arith.constant 0 : i32
    %c0_i32_1 = arith.constant 0 : i32
    return %c0_i32, %c0_i32_0 : i32, i32
  }
  func.func @transform_2(%arg0: i32) -> (i32, i32) {
    %c0_i32 = arith.constant 0 : i32
    %c0_i32_0 = arith.constant 0 : i32
    %c0_i32_1 = arith.constant 0 : i32
    return %c0_i32, %c0_i32_0 : i32, i32
  }
  func.func @transform_3(%arg0: i32) -> (i32, i32) {
    %c0_i32 = arith.constant 0 : i32
    %c0_i32_0 = arith.constant 0 : i32
    %c0_i32_1 = arith.constant 0 : i32
    return %c0_i32, %c0_i32_0 : i32, i32
  }
  func.func @transform_4(%arg0: i32) -> (i32, i32) {
    %c0_i32 = arith.constant 0 : i32
    %c0_i32_0 = arith.constant 0 : i32
    %c0_i32_1 = arith.constant 0 : i32
    return %c0_i32, %c0_i32_0 : i32, i32
  }
  func.func @transform_5(%arg0: i32) -> (i32, i32) {
    %c0_i32 = arith.constant 0 : i32
    %c0_i32_0 = arith.constant 0 : i32
    return %arg0, %c0_i32 : i32, i32
  }
}

module attributes {stable_mosaic.version = 11 : i64} {
  func.func @_ffn_kernel_resident(%arg0: i32, %arg1: memref<16x128xbf16, #tpu.memory_space<vmem>>, %arg2: memref<128x256xbf16, #tpu.memory_space<vmem>>, %arg3: memref<1x256xf32, #tpu.memory_space<vmem>>, %arg4: memref<256x256xbf16, #tpu.memory_space<vmem>>, %arg5: memref<3x256xf32, #tpu.memory_space<vmem>>, %arg6: memref<16x256xf32, #tpu.memory_space<vmem>>) attributes {dimension_semantics = [#tpu.dimension_semantics<parallel>], iteration_bounds = array<i64: 1>, scalar_prefetch = 0 : i64, scratch_operands = 0 : i64, tpu.core_type = #tpu.core_type<tc>, window_params = [{transform_indices = @transform_0, window_bounds = array<i64: 16, 128>}, {pipeline_mode = #tpu.pipeline_mode<synchronous>, transform_indices = @transform_1, window_bounds = array<i64: 128, 256>}, {pipeline_mode = #tpu.pipeline_mode<synchronous>, transform_indices = @transform_2, window_bounds = array<i64: 1, 256>}, {pipeline_mode = #tpu.pipeline_mode<synchronous>, transform_indices = @transform_3, window_bounds = array<i64: 256, 256>}, {pipeline_mode = #tpu.pipeline_mode<synchronous>, transform_indices = @transform_4, window_bounds = array<i64: 3, 256>}, {transform_indices = @transform_5, window_bounds = array<i64: 16, 256>}]} {
    %c0 = arith.constant 0 : index
    %c0_0 = arith.constant 0 : index
    %0 = vector.load %arg1[%c0, %c0_0] : memref<16x128xbf16, #tpu.memory_space<vmem>>, vector<16x128xbf16>
    %c0_1 = arith.constant 0 : index
    %c0_2 = arith.constant 0 : index
    %1 = vector.load %arg2[%c0_1, %c0_2] : memref<128x256xbf16, #tpu.memory_space<vmem>>, vector<128x256xbf16>
    %cst = arith.constant dense<0.000000e+00> : vector<16x256xf32>
    %2 = tpu.matmul %0, %1, %cst {dimension_numbers = #tpu.dot_dimension_numbers<[1], [0], [0], [1], [0, 0, 1, 1], [], []>} : vector<16x128xbf16>, vector<128x256xbf16>, vector<16x256xf32> -> vector<16x256xf32>
    %c0_3 = arith.constant 0 : index
    %c0_4 = arith.constant 0 : index
    %3 = vector.load %arg3[%c0_3, %c0_4] : memref<1x256xf32, #tpu.memory_space<vmem>>, vector<1x256xf32>
    %4 = vector.broadcast %3 : vector<1x256xf32> to vector<16x256xf32>
    %5 = arith.addf %2, %4 : vector<16x256xf32>
    %cst_5 = arith.constant 0.000000e+00 : f32
    %6 = vector.broadcast %cst_5 : f32 to vector<16x256xf32>
    %7 = arith.maximumf %5, %6 : vector<16x256xf32>
    %8 = arith.truncf %7 : vector<16x256xf32> to vector<16x256xbf16>
    %c0_6 = arith.constant 0 : index
    %c0_7 = arith.constant 0 : index
    %9 = vector.load %arg4[%c0_6, %c0_7] : memref<256x256xbf16, #tpu.memory_space<vmem>>, vector<256x256xbf16>
    %cst_8 = arith.constant dense<0.000000e+00> : vector<16x256xf32>
    %10 = tpu.matmul %8, %9, %cst_8 {dimension_numbers = #tpu.dot_dimension_numbers<[1], [0], [0], [1], [0, 0, 1, 1], [], []>} : vector<16x256xbf16>, vector<256x256xbf16>, vector<16x256xf32> -> vector<16x256xf32>
    %c0_9 = arith.constant 0 : index
    %c0_10 = arith.constant 0 : index
    %11 = vector.load %arg5[%c0_9, %c0_10] : memref<3x256xf32, #tpu.memory_space<vmem>>, vector<3x256xf32>
    %12 = vector.extract_strided_slice %11 {offsets = [0, 0], sizes = [1, 256], strides = [1, 1]} : vector<3x256xf32> to vector<1x256xf32>
    %13 = vector.broadcast %12 : vector<1x256xf32> to vector<16x256xf32>
    %14 = arith.addf %10, %13 : vector<16x256xf32>
    %cst_11 = arith.constant dense<0.000000e+00> : vector<16xf32>
    %15 = vector.multi_reduction <add>, %14, %cst_11 [1] : vector<16x256xf32> to vector<16xf32>
    %16 = vector.shape_cast %15 : vector<16xf32> to vector<16x1xf32>
    %cst_12 = arith.constant 3.125000e-02 : f32
    %17 = vector.broadcast %cst_12 : f32 to vector<16x1xf32>
    %18 = arith.mulf %16, %17 : vector<16x1xf32>
    %19 = vector.broadcast %18 : vector<16x1xf32> to vector<16x256xf32>
    %20 = arith.subf %14, %19 : vector<16x256xf32>
    %21 = tpu.iota {dimensions = array<i32: 1>} : vector<16x256xi32>
    %c32_i32 = arith.constant 32 : i32
    %22 = vector.broadcast %c32_i32 : i32 to vector<16x256xi32>
    %23 = arith.cmpi slt, %21, %22 : vector<16x256xi32>
    %cst_13 = arith.constant 0.000000e+00 : f32
    %24 = vector.broadcast %cst_13 : f32 to vector<16x256xf32>
    %25 = arith.select %23, %20, %24 : vector<16x256xi1>, vector<16x256xf32>
    %26 = arith.mulf %25, %25 : vector<16x256xf32>
    %cst_14 = arith.constant dense<0.000000e+00> : vector<16xf32>
    %27 = vector.multi_reduction <add>, %26, %cst_14 [1] : vector<16x256xf32> to vector<16xf32>
    %28 = vector.shape_cast %27 : vector<16xf32> to vector<16x1xf32>
    %cst_15 = arith.constant 3.125000e-02 : f32
    %29 = vector.broadcast %cst_15 : f32 to vector<16x1xf32>
    %30 = arith.mulf %28, %29 : vector<16x1xf32>
    %cst_16 = arith.constant 9.99999974E-6 : f32
    %31 = vector.broadcast %cst_16 : f32 to vector<16x1xf32>
    %32 = arith.addf %30, %31 : vector<16x1xf32>
    %33 = math.rsqrt %32 : vector<16x1xf32>
    %34 = vector.broadcast %33 : vector<16x1xf32> to vector<16x256xf32>
    %35 = arith.mulf %25, %34 : vector<16x256xf32>
    %36 = vector.extract_strided_slice %11 {offsets = [1, 0], sizes = [1, 256], strides = [1, 1]} : vector<3x256xf32> to vector<1x256xf32>
    %37 = vector.broadcast %36 : vector<1x256xf32> to vector<16x256xf32>
    %38 = arith.mulf %35, %37 : vector<16x256xf32>
    %39 = vector.extract_strided_slice %11 {offsets = [2, 0], sizes = [1, 256], strides = [1, 1]} : vector<3x256xf32> to vector<1x256xf32>
    %40 = vector.broadcast %39 : vector<1x256xf32> to vector<16x256xf32>
    %41 = arith.addf %38, %40 : vector<16x256xf32>
    %c0_17 = arith.constant 0 : index
    %c0_18 = arith.constant 0 : index
    %42 = vector.load %arg6[%c0_17, %c0_18] : memref<16x256xf32, #tpu.memory_space<vmem>>, vector<16x256xf32>
    tpu.vector_store %arg6[%c0_17, %c0_18], %41 {strides = array<i32>} : memref<16x256xf32, #tpu.memory_space<vmem>>, vector<16x256xf32>,
    return
  }
  func.func @transform_0(%arg0: i32) -> (i32, i32) {
    %c0_i32 = arith.constant 0 : i32
    %c0_i32_0 = arith.constant 0 : i32
    return %arg0, %c0_i32 : i32, i32
  }
  func.func @transform_1(%arg0: i32) -> (i32, i32) {
    %c0_i32 = arith.constant 0 : i32
    %c0_i32_0 = arith.constant 0 : i32
    %c0_i32_1 = arith.constant 0 : i32
    return %c0_i32, %c0_i32_0 : i32, i32
  }
  func.func @transform_2(%arg0: i32) -> (i32, i32) {
    %c0_i32 = arith.constant 0 : i32
    %c0_i32_0 = arith.constant 0 : i32
    %c0_i32_1 = arith.constant 0 : i32
    return %c0_i32, %c0_i32_0 : i32, i32
  }
  func.func @transform_3(%arg0: i32) -> (i32, i32) {
    %c0_i32 = arith.constant 0 : i32
    %c0_i32_0 = arith.constant 0 : i32
    %c0_i32_1 = arith.constant 0 : i32
    return %c0_i32, %c0_i32_0 : i32, i32
  }
  func.func @transform_4(%arg0: i32) -> (i32, i32) {
    %c0_i32 = arith.constant 0 : i32
    %c0_i32_0 = arith.constant 0 : i32
    %c0_i32_1 = arith.constant 0 : i32
    return %c0_i32, %c0_i32_0 : i32, i32
  }
  func.func @transform_5(%arg0: i32) -> (i32, i32) {
    %c0_i32 = arith.constant 0 : i32
    %c0_i32_0 = arith.constant 0 : i32
    return %arg0, %c0_i32 : i32, i32
  }
}

</mosaic_0001>

<bundles_post_ra>
// kernel: tpu_custom_call.1
= control target key start
LH: loop header
LB: loop body
LE: loop exit
PB: predicated region body
PF: predicated region fallthrough
CT: control target
= control target key end

     0   :  { %10 = vsyncpa [#allocation3], 0  ;;  %s936_s0 = inlined_call_operand.hbm [shape: bf16[16,128], index: 0, kind: input, shape index: {}]   ;;  %s937_s1 = inlined_call_operand.hbm [shape: bf16[128,256], index: 1, kind: input, shape index: {}]   ;;  %s938_s2 = inlined_call_operand.vmem [shape: f32[1,256], index: 2, kind: input, shape index: {}]   ;;  %s939_s3 = inlined_call_operand.hbm [shape: bf16[256,256], index: 3, kind: input, shape index: {}]   ;;  %s940_s4 = inlined_call_operand.vmem [shape: f32[3,256], index: 4, kind: input, shape index: {}]   ;;  %s941_s5 = inlined_call_operand.hbm [shape: f32[16,256], index: 5, kind: output, shape index: {}]  }
   0x1   :  { %11 = vsyncpa [#allocation6], 0 }
   0x2   :  { %12 = vsyncpa [#allocation4], 0  ;;  %s821_s18 = smov [#allocation5]   ;;  %s727_s22 = scalar_lea.hbm %s937_s1, 2048 }
   0x3   :  { %s30_s19 = sshll.u32 %s821_s18, 4  ;;  %p728_p0 = scmp.ne.s32.totalorder %s937_s1, %s727_s22  ;;  %s31_s19 = int_to_ptr.vmem [resolvable:$true] %s30_s19 }
   0x4   :  { %p731_p1 = scmp.lt.u32.totalorder %s727_s22, %s937_s1 }
   0x6   :  { %p733_p2 = pnand %p731_p1, %p728_p0 }
   0x8   :  { %736 = shalt.err (!%p733_p2)
}
   0x9   :  { %s737_s27 = scalar_lea.vmem %s31_s19, 2048  ;;  %p742_p4 = scmp.lt.s32.totalorder %s31_s19, %s31_s19 }
   0xa   :  { %p738_p3 = scmp.ne.s32.totalorder %s31_s19, %s737_s27  ;;  %p743_p5 = scmp.lt.s32.totalorder %s737_s27, %s737_s27 }
   0xc   :  { %p744_p6 = por %p743_p5, %p742_p4 }
   0xe   :  { %p745_p7 = pnand %p744_p6, %p738_p3 }
  0x10   :  { %748 = shalt.err (!%p745_p7)
}
  0x11   :  { %s822_s28 = smov 128   ;;  %s823_s29 = smov 8  }
  0x12   :  { %36 = dma.hbm_to_vmem [thread:$0]  %s937_s1, 2048, %s31_s19, [#allocation6], %s822_s28, %s822_s28, %s823_s29  }
  0x13   :  { %s824_s7 = smov [#allocation2]   ;;  %s749_s11 = scalar_lea.hbm %s936_s0, 128 }
  0x14   :  { %s18_s8 = sshll.u32 %s824_s7, 4  ;;  %p750_p8 = scmp.ne.s32.totalorder %s936_s0, %s749_s11  ;;  %s19_s8 = int_to_ptr.vmem [resolvable:$true] %s18_s8 }
  0x15   :  { %p753_p9 = scmp.lt.u32.totalorder %s749_s11, %s936_s0 }
  0x17   :  { %p755_p10 = pnand %p753_p9, %p750_p8 }
  0x19   :  { %758 = shalt.err (!%p755_p10)
}
  0x1a   :  { %s759_s16 = scalar_lea.vmem %s19_s8, 128  ;;  %p764_p12 = scmp.lt.s32.totalorder %s19_s8, %s19_s8 }
  0x1b   :  { %p760_p11 = scmp.ne.s32.totalorder %s19_s8, %s759_s16  ;;  %p765_p13 = scmp.lt.s32.totalorder %s759_s16, %s759_s16 }
  0x1d   :  { %p766_p0 = por %p765_p13, %p764_p12 }
  0x1f   :  { %p767_p1 = pnand %p766_p0, %p760_p11 }
  0x21   :  { %770 = shalt.err (!%p767_p1)
}
  0x22   :  { %s825_s1 = smov 64   ;;  %s826_s17 = smov 4  }
  0x23   :  { %24 = dma.hbm_to_vmem [thread:$0]  %s936_s0, 128, %s19_s8, [#allocation3], %s825_s1, %s825_s1, %s826_s17  }
  0x24   :  { %s827_s20 = smov [#allocation7]   ;;  %s771_s24 = scalar_lea.hbm %s939_s3, 4096 }
  0x25   :  { %s44_s21 = sshll.u32 %s827_s20, 4  ;;  %p772_p2 = scmp.ne.s32.totalorder %s939_s3, %s771_s24  ;;  %s45_s21 = int_to_ptr.vmem [resolvable:$true] %s44_s21 }
  0x26   :  { %p775_p3 = scmp.lt.u32.totalorder %s771_s24, %s939_s3 }
  0x28   :  { %p777_p4 = pnand %p775_p3, %p772_p2 }
  0x2a   :  { %780 = shalt.err (!%p777_p4)
}
  0x2b   :  { %s781_s6 = scalar_lea.vmem %s45_s21, 4096  ;;  %p786_p6 = scmp.lt.s32.totalorder %s45_s21, %s45_s21 }
  0x2c   :  { %p782_p5 = scmp.ne.s32.totalorder %s45_s21, %s781_s6  ;;  %p787_p7 = scmp.lt.s32.totalorder %s781_s6, %s781_s6 }
  0x2e   :  { %p788_p8 = por %p787_p7, %p786_p6 }
  0x30   :  { %p789_p9 = pnand %p788_p8, %p782_p5 }
  0x32   :  { %792 = shalt.err (!%p789_p9)
}
  0x33   :  { %50 = dma.hbm_to_vmem [thread:$0]  %s939_s3, 4096, %s45_s21, [#allocation6], %s822_s28, %s822_s28, %s823_s29  }
  0x34   :  { %815 = dma.done.wait [#allocation3], 128  }
  0x35   :  { %816 = vsyncadd [#allocation3], 4294967168 }
  0x36   :  { %817 = dma.done.wait [#allocation6], 6144  }
  0x37   :  { %818 = vsyncadd [#allocation6], 4294961152  ;;  %v828_v0 = vmov 0   ;;  %v650_v1 = vld [vmem:[#allocation5 + $0x4] ss:$8 sps:$4 sm:$0xff]   ;;  %v674_v28 = vld [vmem:[#allocation2] sm:$0xff]   ;;  %v83_v50 = vlaneseq }
  0x38   :  { %211 = vmatprep.mubr.bf16.mxu0 %v828_v0  ;;  %v652_v2 = vld [vmem:[#allocation5] ss:$8 sps:$4 sm:$0xff]   ;;  %179 = vmatprep.subr.bf16.mxu0 %v650_v1  ;;  %v653_v3 = vld [vmem:[#allocation5 + $0x14] ss:$8 sps:$4 sm:$0xff]   ;;  %v655_v4 = vld [vmem:[#allocation5 + $0x10] ss:$8 sps:$4 sm:$0xff]  }
  0x39   :  { %180 = vmatpush1.bf16.msra.mxu0 %v652_v2  ;;  %v656_v5 = vld [vmem:[#allocation5 + $0x24] ss:$8 sps:$4 sm:$0xff]   ;;  %v658_v6 = vld [vmem:[#allocation5 + $0x20] ss:$8 sps:$4 sm:$0xff]   ;;  %v659_v7 = vld [vmem:[#allocation5 + $0x34] ss:$8 sps:$4 sm:$0xff]  }
  0x3a   :  { %181 = vmatprep.subr.bf16.mxu0 %v653_v3  ;;  %v661_v8 = vld [vmem:[#allocation5 + $0x30] ss:$8 sps:$4 sm:$0xff]   ;;  %v662_v9 = vld [vmem:[#allocation5 + $0x44] ss:$8 sps:$4 sm:$0xff]   ;;  %v677_v11 = vld [vmem:[#allocation7] ss:$8 sps:$4 sm:$0xff]  }
  0x3b   :  { %v675_v10 = vld [vmem:[#allocation7 + $0x4] ss:$8 sps:$4 sm:$0xff]   ;;  %v678_v12 = vld [vmem:[#allocation7 + $0x14] ss:$8 sps:$4 sm:$0xff]   ;;  %v664_v13 = vld [vmem:[#allocation5 + $0x40] ss:$8 sps:$4 sm:$0xff]  }
  0x3c   :  { %440 = vmatprep.subr.bf16.mxu1 %v675_v10  ;;  %v680_v14 = vld [vmem:[#allocation7 + $0x10] ss:$8 sps:$4 sm:$0xff]   ;;  %v665_v15 = vld [vmem:[#allocation5 + $0x54] ss:$8 sps:$4 sm:$0xff]   ;;  %v681_v16 = vld [vmem:[#allocation7 + $0x24] ss:$8 sps:$4 sm:$0xff]  }
  0x3d   :  { %182 = vmatpush1.bf16.msra.mxu0 %v655_v4  ;;  %441 = vmatpush1.bf16.msra.mxu1 %v677_v11  ;;  %v667_v17 = vld [vmem:[#allocation5 + $0x50] ss:$8 sps:$4 sm:$0xff]   ;;  %v683_v18 = vld [vmem:[#allocation7 + $0x20] ss:$8 sps:$4 sm:$0xff]   ;;  %v668_v19 = vld [vmem:[#allocation5 + $0x64] ss:$8 sps:$4 sm:$0xff]  }
  0x3e   :  { %183 = vmatprep.subr.bf16.mxu0 %v656_v5  ;;  %442 = vmatprep.subr.bf16.mxu1 %v678_v12  ;;  %v684_v20 = vld [vmem:[#allocation7 + $0x34] ss:$8 sps:$4 sm:$0xff]   ;;  %v670_v21 = vld [vmem:[#allocation5 + $0x60] ss:$8 sps:$4 sm:$0xff]   ;;  %v686_v22 = vld [vmem:[#allocation7 + $0x30] ss:$8 sps:$4 sm:$0xff]  }
  0x3f   :  { %v671_v23 = vld [vmem:[#allocation5 + $0x74] ss:$8 sps:$4 sm:$0xff]   ;;  %v687_v24 = vld [vmem:[#allocation7 + $0x44] ss:$8 sps:$4 sm:$0xff]   ;;  %v673_v25 = vld [vmem:[#allocation5 + $0x70] ss:$8 sps:$4 sm:$0xff]  }
  0x40   :  { %v689_v26 = vld [vmem:[#allocation7 + $0x40] ss:$8 sps:$4 sm:$0xff]   ;;  %v690_v27 = vld [vmem:[#allocation7 + $0x54] ss:$8 sps:$4 sm:$0xff]   ;;  %v692_v29 = vld [vmem:[#allocation7 + $0x50] ss:$8 sps:$4 sm:$0xff]  }
  0x41   :  { %184 = vmatpush1.bf16.msra.mxu0 %v658_v6  ;;  %443 = vmatpush1.bf16.msra.mxu1 %v680_v14  ;;  %v693_v30 = vld [vmem:[#allocation7 + $0x64] ss:$8 sps:$4 sm:$0xff]   ;;  %v695_v31 = vld [vmem:[#allocation7 + $0x60] ss:$8 sps:$4 sm:$0xff]   ;;  %v696_v32 = vld [vmem:[#allocation7 + $0x74] ss:$8 sps:$4 sm:$0xff]  }
  0x42   :  { %185 = vmatprep.subr.bf16.mxu0 %v659_v7  ;;  %444 = vmatprep.subr.bf16.mxu1 %v681_v16  ;;  %v698_v33 = vld [vmem:[#allocation7 + $0x70] ss:$8 sps:$4 sm:$0xff]   ;;  %v699_v34 = vld [vmem:[#allocation7 + $0x84] ss:$8 sps:$4 sm:$0xff]   ;;  %v701_v35 = vld [vmem:[#allocation7 + $0x80] ss:$8 sps:$4 sm:$0xff]  }
  0x43   :  { %v702_v36 = vld [vmem:[#allocation7 + $0x94] ss:$8 sps:$4 sm:$0xff]   ;;  %v704_v37 = vld [vmem:[#allocation7 + $0x90] ss:$8 sps:$4 sm:$0xff]   ;;  %v705_v38 = vld [vmem:[#allocation7 + $0xa4] ss:$8 sps:$4 sm:$0xff]  }
  0x44   :  { %v707_v39 = vld [vmem:[#allocation7 + $0xa0] ss:$8 sps:$4 sm:$0xff]   ;;  %v708_v40 = vld [vmem:[#allocation7 + $0xb4] ss:$8 sps:$4 sm:$0xff]   ;;  %v710_v41 = vld [vmem:[#allocation7 + $0xb0] ss:$8 sps:$4 sm:$0xff]  }
  0x45   :  { %186 = vmatpush1.bf16.msra.mxu0 %v661_v8  ;;  %445 = vmatpush1.bf16.msra.mxu1 %v683_v18  ;;  %v711_v42 = vld [vmem:[#allocation7 + $0xc4] ss:$8 sps:$4 sm:$0xff]   ;;  %v713_v43 = vld [vmem:[#allocation7 + $0xc0] ss:$8 sps:$4 sm:$0xff]   ;;  %v714_v44 = vld [vmem:[#allocation7 + $0xd4] ss:$8 sps:$4 sm:$0xff]  }
  0x46   :  { %187 = vmatprep.subr.bf16.mxu0 %v662_v9  ;;  %446 = vmatprep.subr.bf16.mxu1 %v684_v20  ;;  %v716_v45 = vld [vmem:[#allocation7 + $0xd0] ss:$8 sps:$4 sm:$0xff]   ;;  %v717_v46 = vld [vmem:[#allocation7 + $0xe4] ss:$8 sps:$4 sm:$0xff]   ;;  %v719_v47 = vld [vmem:[#allocation7 + $0xe0] ss:$8 sps:$4 sm:$0xff]  }
  0x47   :  { %v720_v48 = vld [vmem:[#allocation7 + $0xf4] ss:$8 sps:$4 sm:$0xff]   ;;  %v722_v49 = vld [vmem:[#allocation7 + $0xf0] ss:$8 sps:$4 sm:$0xff]   ;;  %v904_v51 = vshrl.u32 %v83_v50, 7 }
  0x48   :  { %v81_v53 = vld [vmem:[%s938_s2] sm:$0x3] }
  0x49   :  { %188 = vmatpush1.bf16.msra.mxu0 %v664_v13  ;;  %447 = vmatpush1.bf16.msra.mxu1 %v686_v22  ;;  %v85_v52 = vsub.s32 0, %v904_v51  ;;  %v911_v54 = vsub.s32 1, %v904_v51  ;;  %v260_v7 = vld [vmem:[%s940_s4] sm:$0x77]  ;;  %v268_v8 = vsub.s32 4, %v904_v51  ;;  %s829_s4 = smov [#allocation8]  }
  0x4a   :  { %189 = vmatprep.subr.bf16.mxu0 %v665_v15  ;;  %448 = vmatprep.subr.bf16.mxu1 %v687_v24  ;;  %s577_s8 = sshll.u32 %s829_s4, 4  ;;  %s578_s8 = int_to_ptr.vmem [resolvable:$true] %s577_s8 }
  0x4b   :  { %v86_v55 = vrot.slane %v81_v53, %v85_v52  ;;  %v90_v56 = vrot.slane %v81_v53, %v911_v54  ;;  %v265_v9 = vrot.slane %v260_v7, %v85_v52  ;;  %v269_v10 = vrot.slane %v260_v7, %v268_v8  ;;  %s793_s9 = scalar_lea.vmem %s578_s8, 512  ;;  %p798_p11 = scmp.lt.s32.totalorder %s578_s8, %s578_s8 }
  0x4c   :  { %p794_p10 = scmp.ne.s32.totalorder %s578_s8, %s793_s9  ;;  %p799_p12 = scmp.lt.s32.totalorder %s793_s9, %s793_s9 }
  0x4d   :  { %190 = vmatpush1.bf16.msra.mxu0 %v667_v17  ;;  %449 = vmatpush1.bf16.msra.mxu1 %v689_v26  ;;  %v275_v11 = vrot.slane %v265_v9, %v85_v52  ;;  %v279_v12 = vrot.slane %v269_v10, %v85_v52 }
  0x4e   :  { %191 = vmatprep.subr.bf16.mxu0 %v668_v19  ;;  %450 = vmatprep.subr.bf16.mxu1 %v690_v27  ;;  %p800_p13 = por %p799_p12, %p798_p11 }
  0x50   :  { %p801_p0 = pnand %p800_p13, %p794_p10 }
  0x51   :  { %192 = vmatpush1.bf16.msra.mxu0 %v670_v21  ;;  %451 = vmatpush1.bf16.msra.mxu1 %v692_v29 }
  0x52   :  { %193 = vmatprep.subr.bf16.mxu0 %v671_v23  ;;  %452 = vmatprep.subr.bf16.mxu1 %v693_v30  ;;  %v496_v23 = vand.u32 127, %v83_v50 }
  0x54   :  { %vm498_vm0 = vcmp.lt.s32.totalorder %v496_v23, 32 }
  0x55   :  { %194 = vmatpush1.bf16.msra.mxu0 %v673_v25  ;;  %453 = vmatpush1.bf16.msra.mxu1 %v695_v31 }
  0x56   :  { %454 = vmatprep.subr.bf16.mxu1 %v696_v32 }
  0x58   :  { %212 = vmatmul.mubr.bf16.vlgmr.msra.gmra.mrb[0].mxu0 %v674_v28 }
  0x59   :  { %455 = vmatpush1.bf16.msra.mxu1 %v698_v33 }
  0x5a   :  { %456 = vmatprep.subr.bf16.mxu1 %v699_v34 }
  0x5d   :  { %457 = vmatpush1.bf16.msra.mxu1 %v701_v35 }
  0x5e   :  { %458 = vmatprep.subr.bf16.mxu1 %v702_v36 }
  0x61   :  { %459 = vmatpush1.bf16.msra.mxu1 %v704_v37 }
  0x62   :  { %460 = vmatprep.subr.bf16.mxu1 %v705_v38 }
  0x65   :  { %461 = vmatpush1.bf16.msra.mxu1 %v707_v39  ;;  %v530_v39 = vsub.s32 5, %v904_v51 }
  0x66   :  { %462 = vmatprep.subr.bf16.mxu1 %v708_v40 }
  0x69   :  { %463 = vmatpush1.bf16.msra.mxu1 %v710_v41  ;;  %v548_v41 = vsub.s32 2, %v904_v51 }
  0x6a   :  { %464 = vmatprep.subr.bf16.mxu1 %v711_v42  ;;  %v552_v42 = vsub.s32 6, %v904_v51 }
  0x6d   :  { %465 = vmatpush1.bf16.msra.mxu1 %v713_v43  ;;  %v527_v43 = vrot.slane %v260_v7, %v911_v54 }
  0x6e   :  { %466 = vmatprep.subr.bf16.mxu1 %v714_v44  ;;  %v531_v44 = vrot.slane %v260_v7, %v530_v39 }
  0x71   :  { %467 = vmatpush1.bf16.msra.mxu1 %v716_v45  ;;  %v549_v45 = vrot.slane %v260_v7, %v548_v41 }
  0x72   :  { %468 = vmatprep.subr.bf16.mxu1 %v717_v46  ;;  %v553_v46 = vrot.slane %v260_v7, %v552_v42 }
  0x73   :  { %v559_v50 = vrot.slane %v549_v45, %v548_v41 }
  0x74   :  { %v563_v52 = vrot.slane %v553_v46, %v548_v41 }
  0x75   :  { %469 = vmatpush1.bf16.msra.mxu1 %v719_v47  ;;  %v537_v47 = vrot.slane %v527_v43, %v911_v54 }
  0x76   :  { %470 = vmatprep.subr.bf16.mxu1 %v720_v48  ;;  %v541_v48 = vrot.slane %v531_v44, %v911_v54 }
  0x79   :  { %471 = vmatpush1.bf16.msra.mxu1 %v722_v49 }
 0x12b   :  { %v213_v57 = vpop.f32.mrb[0].mxu0 }
 0x12c   :  { %v214_v58 = vadd.f32 %v213_v57, %v86_v55  ;;  %v215_v59 = vpop.f32.mrb[1].mxu0 }
 0x12d   :  { %v216_v60 = vadd.f32 %v215_v59, %v90_v56  ;;  %v217_v61 = vpop.f32.mrb[2].mxu0 }
 0x12e   :  { %v218_v62 = vadd.f32 %v217_v61, %v86_v55  ;;  %v219_v63 = vpop.f32.mrb[3].mxu0  ;;  %v222_v1 = vmax.f32 %v214_v58, 0.0 }
 0x12f   :  { %v220_v0 = vadd.f32 %v219_v63, %v90_v56  ;;  %v223_v3 = vmax.f32 %v216_v60, 0.0 }
 0x130   :  { %v224_v2 = vmax.f32 %v218_v62, 0.0 }
 0x131   :  { %v225_v4 = vmax.f32 %v220_v0, 0.0 }
 0x132   :  { %v226_v5 = vpack.c.bf16 %v224_v2, %v222_v1 }
 0x133   :  { %v227_v6 = vpack.c.bf16 %v225_v4, %v223_v3 }
 0x135   :  { %472 = vmatprep.mubr.bf16.mxu1 %v227_v6 }
 0x136   :  { %473 = vmatmul.mubr.bf16.vlgmr.msra.gmra.mrb[0].mxu1 %v226_v5 }
 0x209   :  { %v474_v13 = vpop.f32.mrb[0].mxu1 }
 0x20a   :  { %v475_v14 = vadd.f32 %v474_v13, %v275_v11  ;;  %v476_v15 = vpop.f32.mrb[1].mxu1 }
 0x20b   :  { %v477_v16 = vadd.f32 %v476_v15, %v279_v12  ;;  %v478_v17 = vpop.f32.mrb[2].mxu1 }
 0x20c   :  { %v480_v18 = vpop.f32.mrb[3].mxu1  ;;  %v479_v19 = vadd.f32 %v478_v17, %v275_v11 }
 0x20d   :  { %v481_v20 = vadd.f32 %v480_v18, %v279_v12  ;;  %v483_v21 = vadd.f32 %v477_v16, %v475_v14 }
 0x20f   :  { %484 = vadd.xlane.f32.xlu0 %v483_v21  ;;  %v486_v22 = vadd.f32 %v481_v20, %v479_v19 }
 0x213   :  { %487 = vadd.xlane.f32.xlu0 %v486_v22 }
 0x29c   :  { %v485_v24 = vpop.xlane.xlu0 %484 }
 0x29d   :  { %v489_v25 = vmul.f32 0.03125, %v485_v24 }
 0x29f   :  { %v491_v26 = vsub.f32 %v475_v14, %v489_v25 }
 0x2a0   :  { %v488_v27 = vpop.xlane.xlu0 %487 }
 0x2a1   :  { %v490_v28 = vmul.f32 0.03125, %v488_v27  ;;  %v500_v29 = vsel %vm498_vm0, %v491_v26, 0.0 }
 0x2a2   :  { %v504_v30 = vmul.f32 %v500_v29, %v500_v29 }
 0x2a3   :  { %v493_v31 = vsub.f32 %v479_v19, %v490_v28 }
 0x2a4   :  { %509 = vadd.xlane.f32.xlu1 %v504_v30 }
 0x2a5   :  { %v502_v32 = vsel %vm498_vm0, %v493_v31, 0.0 }
 0x2a6   :  { %v506_v33 = vmul.f32 %v502_v32, %v502_v32 }
 0x2a8   :  { %512 = vadd.xlane.f32.xlu1 %v506_v33 }
 0x331   :  { %v510_v34 = vpop.xlane.xlu1 %509 }
 0x332   :  { %v514_v35 = vmul.f32 0.03125, %v510_v34 }
 0x334   :  { %v516_v36 = vadd.f32 1e-05, %v514_v35 }
 0x335   :  { %v513_v37 = vpop.xlane.xlu1 %512 }
 0x336   :  { %723 = vrsqrt.f32 %v516_v36  ;;  %v515_v38 = vmul.f32 0.03125, %v513_v37 }
 0x338   :  { %v517_v40 = vadd.f32 1e-05, %v515_v38 }
 0x33a   :  { %725 = vrsqrt.f32 %v517_v40 }
 0x340   :  { %v724_v49 = vpop.eup %723 }
 0x341   :  { %v520_v53 = vmul.f32 %v724_v49, %v500_v29  ;;  %v521_v55 = vmul.f32 0.0, %v724_v49 }
 0x343   :  { %v542_v56 = vmul.f32 %v537_v47, %v520_v53  ;;  %v543_v57 = vmul.f32 %v541_v48, %v521_v55 }
 0x344   :  { %v726_v58 = vpop.eup %725 }
 0x345   :  { %v564_v59 = vadd.f32 %v559_v50, %v542_v56  ;;  %v565_v51 = vadd.f32 %v563_v52, %v543_v57  ;;  %v522_v60 = vmul.f32 %v726_v58, %v502_v32  ;;  %v523_v61 = vmul.f32 0.0, %v726_v58 }
 0x347   :  { %568 = vst [vmem:[#allocation8] sm:$0xff] %v564_v59  ;;  %569 = vst [vmem:[#allocation8 + $0x8] sm:$0xff] %v565_v51  ;;  %v544_v62 = vmul.f32 %v537_v47, %v522_v60  ;;  %v545_v63 = vmul.f32 %v541_v48, %v523_v61 }
 0x349   :  { %v566_v54 = vadd.f32 %v559_v50, %v544_v62  ;;  %v567_v0 = vadd.f32 %v563_v52, %v545_v63 }
 0x34b   :  { %570 = vst [vmem:[#allocation8 + $0x10] sm:$0xff] %v566_v54  ;;  %571 = vst [vmem:[#allocation8 + $0x18] sm:$0xff] %v567_v0 }
 0x34c   :  { %804 = shalt.err (!%p801_p0)
}
 0x34d   :  { %s805_s12 = scalar_lea.hbm %s941_s5, 512 }
 0x34e   :  { %p806_p1 = scmp.ne.s32.totalorder %s941_s5, %s805_s12  ;;  %p809_p2 = scmp.lt.u32.totalorder %s805_s12, %s941_s5 }
 0x350   :  { %p811_p3 = pnand %p809_p2, %p806_p1 }
 0x352   :  { %814 = shalt.err (!%p811_p3)
}
 0x353   :  { %s830_s1 = smov 256   ;;  %s831_s17 = smov 16  }
 0x354   :  { %583 = dma.vmem_to_hbm [thread:$0]  %s578_s8, 512, %s941_s5, [#allocation4], %s830_s1, %s830_s1, %s831_s17  }
 0x355   :  { %819 = dma.done.wait [#allocation4], 512  }
 0x356   :  { %820 = vsyncadd [#allocation4], 4294966784 }
 0x357   :  { %587 = vsyncpa [#allocation3], 1 }
 0x358   :  { %588 = vsyncpa [#allocation6], 1 }
 0x359   :  { %589 = vsyncpa [#allocation4], 1 }

// kernel: tpu_custom_call.1
= control target key start
LH: loop header
LB: loop body
LE: loop exit
PB: predicated region body
PF: predicated region fallthrough
CT: control target
= control target key end

     0   :  { %10 = vsyncpa [#allocation3], 0  ;;  %s936_s0 = inlined_call_operand.hbm [shape: bf16[16,128], index: 0, kind: input, shape index: {}]   ;;  %s937_s1 = inlined_call_operand.hbm [shape: bf16[128,256], index: 1, kind: input, shape index: {}]   ;;  %s938_s2 = inlined_call_operand.vmem [shape: f32[1,256], index: 2, kind: input, shape index: {}]   ;;  %s939_s3 = inlined_call_operand.hbm [shape: bf16[256,256], index: 3, kind: input, shape index: {}]   ;;  %s940_s4 = inlined_call_operand.vmem [shape: f32[3,256], index: 4, kind: input, shape index: {}]   ;;  %s941_s5 = inlined_call_operand.hbm [shape: f32[16,256], index: 5, kind: output, shape index: {}]  }
   0x1   :  { %11 = vsyncpa [#allocation6], 0 }
   0x2   :  { %12 = vsyncpa [#allocation4], 0  ;;  %s821_s18 = smov [#allocation5]   ;;  %s727_s22 = scalar_lea.hbm %s937_s1, 2048 }
   0x3   :  { %s30_s19 = sshll.u32 %s821_s18, 4  ;;  %p728_p0 = scmp.ne.s32.totalorder %s937_s1, %s727_s22  ;;  %s31_s19 = int_to_ptr.vmem [resolvable:$true] %s30_s19 }
   0x4   :  { %p731_p1 = scmp.lt.u32.totalorder %s727_s22, %s937_s1 }
   0x6   :  { %p733_p2 = pnand %p731_p1, %p728_p0 }
   0x8   :  { %736 = shalt.err (!%p733_p2)
}
   0x9   :  { %s737_s27 = scalar_lea.vmem %s31_s19, 2048  ;;  %p742_p4 = scmp.lt.s32.totalorder %s31_s19, %s31_s19 }
   0xa   :  { %p738_p3 = scmp.ne.s32.totalorder %s31_s19, %s737_s27  ;;  %p743_p5 = scmp.lt.s32.totalorder %s737_s27, %s737_s27 }
   0xc   :  { %p744_p6 = por %p743_p5, %p742_p4 }
   0xe   :  { %p745_p7 = pnand %p744_p6, %p738_p3 }
  0x10   :  { %748 = shalt.err (!%p745_p7)
}
  0x11   :  { %s822_s28 = smov 128   ;;  %s823_s29 = smov 8  }
  0x12   :  { %36 = dma.hbm_to_vmem [thread:$0]  %s937_s1, 2048, %s31_s19, [#allocation6], %s822_s28, %s822_s28, %s823_s29  }
  0x13   :  { %s824_s7 = smov [#allocation2]   ;;  %s749_s11 = scalar_lea.hbm %s936_s0, 128 }
  0x14   :  { %s18_s8 = sshll.u32 %s824_s7, 4  ;;  %p750_p8 = scmp.ne.s32.totalorder %s936_s0, %s749_s11  ;;  %s19_s8 = int_to_ptr.vmem [resolvable:$true] %s18_s8 }
  0x15   :  { %p753_p9 = scmp.lt.u32.totalorder %s749_s11, %s936_s0 }
  0x17   :  { %p755_p10 = pnand %p753_p9, %p750_p8 }
  0x19   :  { %758 = shalt.err (!%p755_p10)
}
  0x1a   :  { %s759_s16 = scalar_lea.vmem %s19_s8, 128  ;;  %p764_p12 = scmp.lt.s32.totalorder %s19_s8, %s19_s8 }
  0x1b   :  { %p760_p11 = scmp.ne.s32.totalorder %s19_s8, %s759_s16  ;;  %p765_p13 = scmp.lt.s32.totalorder %s759_s16, %s759_s16 }
  0x1d   :  { %p766_p0 = por %p765_p13, %p764_p12 }
  0x1f   :  { %p767_p1 = pnand %p766_p0, %p760_p11 }
  0x21   :  { %770 = shalt.err (!%p767_p1)
}
  0x22   :  { %s825_s1 = smov 64   ;;  %s826_s17 = smov 4  }
  0x23   :  { %24 = dma.hbm_to_vmem [thread:$0]  %s936_s0, 128, %s19_s8, [#allocation3], %s825_s1, %s825_s1, %s826_s17  }
  0x24   :  { %s827_s20 = smov [#allocation7]   ;;  %s771_s24 = scalar_lea.hbm %s939_s3, 4096 }
  0x25   :  { %s44_s21 = sshll.u32 %s827_s20, 4  ;;  %p772_p2 = scmp.ne.s32.totalorder %s939_s3, %s771_s24  ;;  %s45_s21 = int_to_ptr.vmem [resolvable:$true] %s44_s21 }
  0x26   :  { %p775_p3 = scmp.lt.u32.totalorder %s771_s24, %s939_s3 }
  0x28   :  { %p777_p4 = pnand %p775_p3, %p772_p2 }
  0x2a   :  { %780 = shalt.err (!%p777_p4)
}
  0x2b   :  { %s781_s6 = scalar_lea.vmem %s45_s21, 4096  ;;  %p786_p6 = scmp.lt.s32.totalorder %s45_s21, %s45_s21 }
  0x2c   :  { %p782_p5 = scmp.ne.s32.totalorder %s45_s21, %s781_s6  ;;  %p787_p7 = scmp.lt.s32.totalorder %s781_s6, %s781_s6 }
  0x2e   :  { %p788_p8 = por %p787_p7, %p786_p6 }
  0x30   :  { %p789_p9 = pnand %p788_p8, %p782_p5 }
  0x32   :  { %792 = shalt.err (!%p789_p9)
}
  0x33   :  { %50 = dma.hbm_to_vmem [thread:$0]  %s939_s3, 4096, %s45_s21, [#allocation6], %s822_s28, %s822_s28, %s823_s29  }
  0x34   :  { %815 = dma.done.wait [#allocation3], 128  }
  0x35   :  { %816 = vsyncadd [#allocation3], 4294967168 }
  0x36   :  { %817 = dma.done.wait [#allocation6], 6144  }
  0x37   :  { %818 = vsyncadd [#allocation6], 4294961152  ;;  %v828_v0 = vmov 0   ;;  %v650_v1 = vld [vmem:[#allocation5 + $0x4] ss:$8 sps:$4 sm:$0xff]   ;;  %v674_v28 = vld [vmem:[#allocation2] sm:$0xff]   ;;  %v83_v50 = vlaneseq }
  0x38   :  { %211 = vmatprep.mubr.bf16.mxu0 %v828_v0  ;;  %v652_v2 = vld [vmem:[#allocation5] ss:$8 sps:$4 sm:$0xff]   ;;  %179 = vmatprep.subr.bf16.mxu0 %v650_v1  ;;  %v653_v3 = vld [vmem:[#allocation5 + $0x14] ss:$8 sps:$4 sm:$0xff]   ;;  %v655_v4 = vld [vmem:[#allocation5 + $0x10] ss:$8 sps:$4 sm:$0xff]  }
  0x39   :  { %180 = vmatpush1.bf16.msra.mxu0 %v652_v2  ;;  %v656_v5 = vld [vmem:[#allocation5 + $0x24] ss:$8 sps:$4 sm:$0xff]   ;;  %v658_v6 = vld [vmem:[#allocation5 + $0x20] ss:$8 sps:$4 sm:$0xff]   ;;  %v659_v7 = vld [vmem:[#allocation5 + $0x34] ss:$8 sps:$4 sm:$0xff]  }
  0x3a   :  { %181 = vmatprep.subr.bf16.mxu0 %v653_v3  ;;  %v661_v8 = vld [vmem:[#allocation5 + $0x30] ss:$8 sps:$4 sm:$0xff]   ;;  %v662_v9 = vld [vmem:[#allocation5 + $0x44] ss:$8 sps:$4 sm:$0xff]   ;;  %v677_v11 = vld [vmem:[#allocation7] ss:$8 sps:$4 sm:$0xff]  }
  0x3b   :  { %v675_v10 = vld [vmem:[#allocation7 + $0x4] ss:$8 sps:$4 sm:$0xff]   ;;  %v678_v12 = vld [vmem:[#allocation7 + $0x14] ss:$8 sps:$4 sm:$0xff]   ;;  %v664_v13 = vld [vmem:[#allocation5 + $0x40] ss:$8 sps:$4 sm:$0xff]  }
  0x3c   :  { %440 = vmatprep.subr.bf16.mxu1 %v675_v10  ;;  %v680_v14 = vld [vmem:[#allocation7 + $0x10] ss:$8 sps:$4 sm:$0xff]   ;;  %v665_v15 = vld [vmem:[#allocation5 + $0x54] ss:$8 sps:$4 sm:$0xff]   ;;  %v681_v16 = vld [vmem:[#allocation7 + $0x24] ss:$8 sps:$4 sm:$0xff]  }
  0x3d   :  { %182 = vmatpush1.bf16.msra.mxu0 %v655_v4  ;;  %441 = vmatpush1.bf16.msra.mxu1 %v677_v11  ;;  %v667_v17 = vld [vmem:[#allocation5 + $0x50] ss:$8 sps:$4 sm:$0xff]   ;;  %v683_v18 = vld [vmem:[#allocation7 + $0x20] ss:$8 sps:$4 sm:$0xff]   ;;  %v668_v19 = vld [vmem:[#allocation5 + $0x64] ss:$8 sps:$4 sm:$0xff]  }
  0x3e   :  { %183 = vmatprep.subr.bf16.mxu0 %v656_v5  ;;  %442 = vmatprep.subr.bf16.mxu1 %v678_v12  ;;  %v684_v20 = vld [vmem:[#allocation7 + $0x34] ss:$8 sps:$4 sm:$0xff]   ;;  %v670_v21 = vld [vmem:[#allocation5 + $0x60] ss:$8 sps:$4 sm:$0xff]   ;;  %v686_v22 = vld [vmem:[#allocation7 + $0x30] ss:$8 sps:$4 sm:$0xff]  }
  0x3f   :  { %v671_v23 = vld [vmem:[#allocation5 + $0x74] ss:$8 sps:$4 sm:$0xff]   ;;  %v687_v24 = vld [vmem:[#allocation7 + $0x44] ss:$8 sps:$4 sm:$0xff]   ;;  %v673_v25 = vld [vmem:[#allocation5 + $0x70] ss:$8 sps:$4 sm:$0xff]  }
  0x40   :  { %v689_v26 = vld [vmem:[#allocation7 + $0x40] ss:$8 sps:$4 sm:$0xff]   ;;  %v690_v27 = vld [vmem:[#allocation7 + $0x54] ss:$8 sps:$4 sm:$0xff]   ;;  %v692_v29 = vld [vmem:[#allocation7 + $0x50] ss:$8 sps:$4 sm:$0xff]  }
  0x41   :  { %184 = vmatpush1.bf16.msra.mxu0 %v658_v6  ;;  %443 = vmatpush1.bf16.msra.mxu1 %v680_v14  ;;  %v693_v30 = vld [vmem:[#allocation7 + $0x64] ss:$8 sps:$4 sm:$0xff]   ;;  %v695_v31 = vld [vmem:[#allocation7 + $0x60] ss:$8 sps:$4 sm:$0xff]   ;;  %v696_v32 = vld [vmem:[#allocation7 + $0x74] ss:$8 sps:$4 sm:$0xff]  }
  0x42   :  { %185 = vmatprep.subr.bf16.mxu0 %v659_v7  ;;  %444 = vmatprep.subr.bf16.mxu1 %v681_v16  ;;  %v698_v33 = vld [vmem:[#allocation7 + $0x70] ss:$8 sps:$4 sm:$0xff]   ;;  %v699_v34 = vld [vmem:[#allocation7 + $0x84] ss:$8 sps:$4 sm:$0xff]   ;;  %v701_v35 = vld [vmem:[#allocation7 + $0x80] ss:$8 sps:$4 sm:$0xff]  }
  0x43   :  { %v702_v36 = vld [vmem:[#allocation7 + $0x94] ss:$8 sps:$4 sm:$0xff]   ;;  %v704_v37 = vld [vmem:[#allocation7 + $0x90] ss:$8 sps:$4 sm:$0xff]   ;;  %v705_v38 = vld [vmem:[#allocation7 + $0xa4] ss:$8 sps:$4 sm:$0xff]  }
  0x44   :  { %v707_v39 = vld [vmem:[#allocation7 + $0xa0] ss:$8 sps:$4 sm:$0xff]   ;;  %v708_v40 = vld [vmem:[#allocation7 + $0xb4] ss:$8 sps:$4 sm:$0xff]   ;;  %v710_v41 = vld [vmem:[#allocation7 + $0xb0] ss:$8 sps:$4 sm:$0xff]  }
  0x45   :  { %186 = vmatpush1.bf16.msra.mxu0 %v661_v8  ;;  %445 = vmatpush1.bf16.msra.mxu1 %v683_v18  ;;  %v711_v42 = vld [vmem:[#allocation7 + $0xc4] ss:$8 sps:$4 sm:$0xff]   ;;  %v713_v43 = vld [vmem:[#allocation7 + $0xc0] ss:$8 sps:$4 sm:$0xff]   ;;  %v714_v44 = vld [vmem:[#allocation7 + $0xd4] ss:$8 sps:$4 sm:$0xff]  }
  0x46   :  { %187 = vmatprep.subr.bf16.mxu0 %v662_v9  ;;  %446 = vmatprep.subr.bf16.mxu1 %v684_v20  ;;  %v716_v45 = vld [vmem:[#allocation7 + $0xd0] ss:$8 sps:$4 sm:$0xff]   ;;  %v717_v46 = vld [vmem:[#allocation7 + $0xe4] ss:$8 sps:$4 sm:$0xff]   ;;  %v719_v47 = vld [vmem:[#allocation7 + $0xe0] ss:$8 sps:$4 sm:$0xff]  }
  0x47   :  { %v720_v48 = vld [vmem:[#allocation7 + $0xf4] ss:$8 sps:$4 sm:$0xff]   ;;  %v722_v49 = vld [vmem:[#allocation7 + $0xf0] ss:$8 sps:$4 sm:$0xff]   ;;  %v904_v51 = vshrl.u32 %v83_v50, 7 }
  0x48   :  { %v81_v53 = vld [vmem:[%s938_s2] sm:$0x3] }
  0x49   :  { %188 = vmatpush1.bf16.msra.mxu0 %v664_v13  ;;  %447 = vmatpush1.bf16.msra.mxu1 %v686_v22  ;;  %v85_v52 = vsub.s32 0, %v904_v51  ;;  %v911_v54 = vsub.s32 1, %v904_v51  ;;  %v260_v7 = vld [vmem:[%s940_s4] sm:$0x77]  ;;  %v268_v8 = vsub.s32 4, %v904_v51  ;;  %s829_s4 = smov [#allocation8]  }
  0x4a   :  { %189 = vmatprep.subr.bf16.mxu0 %v665_v15  ;;  %448 = vmatprep.subr.bf16.mxu1 %v687_v24  ;;  %s577_s8 = sshll.u32 %s829_s4, 4  ;;  %s578_s8 = int_to_ptr.vmem [resolvable:$true] %s577_s8 }
  0x4b   :  { %v86_v55 = vrot.slane %v81_v53, %v85_v52  ;;  %v90_v56 = vrot.slane %v81_v53, %v911_v54  ;;  %v265_v9 = vrot.slane %v260_v7, %v85_v52  ;;  %v269_v10 = vrot.slane %v260_v7, %v268_v8  ;;  %s793_s9 = scalar_lea.vmem %s578_s8, 512  ;;  %p798_p11 = scmp.lt.s32.totalorder %s578_s8, %s578_s8 }
  0x4c   :  { %p794_p10 = scmp.ne.s32.totalorder %s578_s8, %s793_s9  ;;  %p799_p12 = scmp.lt.s32.totalorder %s793_s9, %s793_s9 }
  0x4d   :  { %190 = vmatpush1.bf16.msra.mxu0 %v667_v17  ;;  %449 = vmatpush1.bf16.msra.mxu1 %v689_v26  ;;  %v275_v11 = vrot.slane %v265_v9, %v85_v52  ;;  %v279_v12 = vrot.slane %v269_v10, %v85_v52 }
  0x4e   :  { %191 = vmatprep.subr.bf16.mxu0 %v668_v19  ;;  %450 = vmatprep.subr.bf16.mxu1 %v690_v27  ;;  %p800_p13 = por %p799_p12, %p798_p11 }
  0x50   :  { %p801_p0 = pnand %p800_p13, %p794_p10 }
  0x51   :  { %192 = vmatpush1.bf16.msra.mxu0 %v670_v21  ;;  %451 = vmatpush1.bf16.msra.mxu1 %v692_v29 }
  0x52   :  { %193 = vmatprep.subr.bf16.mxu0 %v671_v23  ;;  %452 = vmatprep.subr.bf16.mxu1 %v693_v30  ;;  %v496_v23 = vand.u32 127, %v83_v50 }
  0x54   :  { %vm498_vm0 = vcmp.lt.s32.totalorder %v496_v23, 32 }
  0x55   :  { %194 = vmatpush1.bf16.msra.mxu0 %v673_v25  ;;  %453 = vmatpush1.bf16.msra.mxu1 %v695_v31 }
  0x56   :  { %454 = vmatprep.subr.bf16.mxu1 %v696_v32 }
  0x58   :  { %212 = vmatmul.mubr.bf16.vlgmr.msra.gmra.mrb[0].mxu0 %v674_v28 }
  0x59   :  { %455 = vmatpush1.bf16.msra.mxu1 %v698_v33 }
  0x5a   :  { %456 = vmatprep.subr.bf16.mxu1 %v699_v34 }
  0x5d   :  { %457 = vmatpush1.bf16.msra.mxu1 %v701_v35 }
  0x5e   :  { %458 = vmatprep.subr.bf16.mxu1 %v702_v36 }
  0x61   :  { %459 = vmatpush1.bf16.msra.mxu1 %v704_v37 }
  0x62   :  { %460 = vmatprep.subr.bf16.mxu1 %v705_v38 }
  0x65   :  { %461 = vmatpush1.bf16.msra.mxu1 %v707_v39  ;;  %v530_v39 = vsub.s32 5, %v904_v51 }
  0x66   :  { %462 = vmatprep.subr.bf16.mxu1 %v708_v40 }
  0x69   :  { %463 = vmatpush1.bf16.msra.mxu1 %v710_v41  ;;  %v548_v41 = vsub.s32 2, %v904_v51 }
  0x6a   :  { %464 = vmatprep.subr.bf16.mxu1 %v711_v42  ;;  %v552_v42 = vsub.s32 6, %v904_v51 }
  0x6d   :  { %465 = vmatpush1.bf16.msra.mxu1 %v713_v43  ;;  %v527_v43 = vrot.slane %v260_v7, %v911_v54 }
  0x6e   :  { %466 = vmatprep.subr.bf16.mxu1 %v714_v44  ;;  %v531_v44 = vrot.slane %v260_v7, %v530_v39 }
  0x71   :  { %467 = vmatpush1.bf16.msra.mxu1 %v716_v45  ;;  %v549_v45 = vrot.slane %v260_v7, %v548_v41 }
  0x72   :  { %468 = vmatprep.subr.bf16.mxu1 %v717_v46  ;;  %v553_v46 = vrot.slane %v260_v7, %v552_v42 }
  0x73   :  { %v559_v50 = vrot.slane %v549_v45, %v548_v41 }
  0x74   :  { %v563_v52 = vrot.slane %v553_v46, %v548_v41 }
  0x75   :  { %469 = vmatpush1.bf16.msra.mxu1 %v719_v47  ;;  %v537_v47 = vrot.slane %v527_v43, %v911_v54 }
  0x76   :  { %470 = vmatprep.subr.bf16.mxu1 %v720_v48  ;;  %v541_v48 = vrot.slane %v531_v44, %v911_v54 }
  0x79   :  { %471 = vmatpush1.bf16.msra.mxu1 %v722_v49 }
 0x12b   :  { %v213_v57 = vpop.f32.mrb[0].mxu0 }
 0x12c   :  { %v214_v58 = vadd.f32 %v213_v57, %v86_v55  ;;  %v215_v59 = vpop.f32.mrb[1].mxu0 }
 0x12d   :  { %v216_v60 = vadd.f32 %v215_v59, %v90_v56  ;;  %v217_v61 = vpop.f32.mrb[2].mxu0 }
 0x12e   :  { %v218_v62 = vadd.f32 %v217_v61, %v86_v55  ;;  %v219_v63 = vpop.f32.mrb[3].mxu0  ;;  %v222_v1 = vmax.f32 %v214_v58, 0.0 }
 0x12f   :  { %v220_v0 = vadd.f32 %v219_v63, %v90_v56  ;;  %v223_v3 = vmax.f32 %v216_v60, 0.0 }
 0x130   :  { %v224_v2 = vmax.f32 %v218_v62, 0.0 }
 0x131   :  { %v225_v4 = vmax.f32 %v220_v0, 0.0 }
 0x132   :  { %v226_v5 = vpack.c.bf16 %v224_v2, %v222_v1 }
 0x133   :  { %v227_v6 = vpack.c.bf16 %v225_v4, %v223_v3 }
 0x135   :  { %472 = vmatprep.mubr.bf16.mxu1 %v227_v6 }
 0x136   :  { %473 = vmatmul.mubr.bf16.vlgmr.msra.gmra.mrb[0].mxu1 %v226_v5 }
 0x209   :  { %v474_v13 = vpop.f32.mrb[0].mxu1 }
 0x20a   :  { %v475_v14 = vadd.f32 %v474_v13, %v275_v11  ;;  %v476_v15 = vpop.f32.mrb[1].mxu1 }
 0x20b   :  { %v477_v16 = vadd.f32 %v476_v15, %v279_v12  ;;  %v478_v17 = vpop.f32.mrb[2].mxu1 }
 0x20c   :  { %v480_v18 = vpop.f32.mrb[3].mxu1  ;;  %v479_v19 = vadd.f32 %v478_v17, %v275_v11 }
 0x20d   :  { %v481_v20 = vadd.f32 %v480_v18, %v279_v12  ;;  %v483_v21 = vadd.f32 %v477_v16, %v475_v14 }
 0x20f   :  { %484 = vadd.xlane.f32.xlu0 %v483_v21  ;;  %v486_v22 = vadd.f32 %v481_v20, %v479_v19 }
 0x213   :  { %487 = vadd.xlane.f32.xlu0 %v486_v22 }
 0x29c   :  { %v485_v24 = vpop.xlane.xlu0 %484 }
 0x29d   :  { %v489_v25 = vmul.f32 0.03125, %v485_v24 }
 0x29f   :  { %v491_v26 = vsub.f32 %v475_v14, %v489_v25 }
 0x2a0   :  { %v488_v27 = vpop.xlane.xlu0 %487 }
 0x2a1   :  { %v490_v28 = vmul.f32 0.03125, %v488_v27  ;;  %v500_v29 = vsel %vm498_vm0, %v491_v26, 0.0 }
 0x2a2   :  { %v504_v30 = vmul.f32 %v500_v29, %v500_v29 }
 0x2a3   :  { %v493_v31 = vsub.f32 %v479_v19, %v490_v28 }
 0x2a4   :  { %509 = vadd.xlane.f32.xlu1 %v504_v30 }
 0x2a5   :  { %v502_v32 = vsel %vm498_vm0, %v493_v31, 0.0 }
 0x2a6   :  { %v506_v33 = vmul.f32 %v502_v32, %v502_v32 }
 0x2a8   :  { %512 = vadd.xlane.f32.xlu1 %v506_v33 }
 0x331   :  { %v510_v34 = vpop.xlane.xlu1 %509 }
 0x332   :  { %v514_v35 = vmul.f32 0.03125, %v510_v34 }
 0x334   :  { %v516_v36 = vadd.f32 1e-05, %v514_v35 }
 0x335   :  { %v513_v37 = vpop.xlane.xlu1 %512 }
 0x336   :  { %723 = vrsqrt.f32 %v516_v36  ;;  %v515_v38 = vmul.f32 0.03125, %v513_v37 }
 0x338   :  { %v517_v40 = vadd.f32 1e-05, %v515_v38 }
 0x33a   :  { %725 = vrsqrt.f32 %v517_v40 }
 0x340   :  { %v724_v49 = vpop.eup %723 }
 0x341   :  { %v520_v53 = vmul.f32 %v724_v49, %v500_v29  ;;  %v521_v55 = vmul.f32 0.0, %v724_v49 }
 0x343   :  { %v542_v56 = vmul.f32 %v537_v47, %v520_v53  ;;  %v543_v57 = vmul.f32 %v541_v48, %v521_v55 }
 0x344   :  { %v726_v58 = vpop.eup %725 }
 0x345   :  { %v564_v59 = vadd.f32 %v559_v50, %v542_v56  ;;  %v565_v51 = vadd.f32 %v563_v52, %v543_v57  ;;  %v522_v60 = vmul.f32 %v726_v58, %v502_v32  ;;  %v523_v61 = vmul.f32 0.0, %v726_v58 }
 0x347   :  { %568 = vst [vmem:[#allocation8] sm:$0xff] %v564_v59  ;;  %569 = vst [vmem:[#allocation8 + $0x8] sm:$0xff] %v565_v51  ;;  %v544_v62 = vmul.f32 %v537_v47, %v522_v60  ;;  %v545_v63 = vmul.f32 %v541_v48, %v523_v61 }
 0x349   :  { %v566_v54 = vadd.f32 %v559_v50, %v544_v62  ;;  %v567_v0 = vadd.f32 %v563_v52, %v545_v63 }
 0x34b   :  { %570 = vst [vmem:[#allocation8 + $0x10] sm:$0xff] %v566_v54  ;;  %571 = vst [vmem:[#allocation8 + $0x18] sm:$0xff] %v567_v0 }
 0x34c   :  { %804 = shalt.err (!%p801_p0)
}
 0x34d   :  { %s805_s12 = scalar_lea.hbm %s941_s5, 512 }
 0x34e   :  { %p806_p1 = scmp.ne.s32.totalorder %s941_s5, %s805_s12  ;;  %p809_p2 = scmp.lt.u32.totalorder %s805_s12, %s941_s5 }
 0x350   :  { %p811_p3 = pnand %p809_p2, %p806_p1 }
 0x352   :  { %814 = shalt.err (!%p811_p3)
}
 0x353   :  { %s830_s1 = smov 256   ;;  %s831_s17 = smov 16  }
 0x354   :  { %583 = dma.vmem_to_hbm [thread:$0]  %s578_s8, 512, %s941_s5, [#allocation4], %s830_s1, %s830_s1, %s831_s17  }
 0x355   :  { %819 = dma.done.wait [#allocation4], 512  }
 0x356   :  { %820 = vsyncadd [#allocation4], 4294966784 }
 0x357   :  { %587 = vsyncpa [#allocation3], 1 }
 0x358   :  { %588 = vsyncpa [#allocation6], 1 }
 0x359   :  { %589 = vsyncpa [#allocation4], 1 }

</bundles_post_ra>
